<compile_context>
chip_gen: v6e
topology: v6e:2x2x1
jax: 0.10.0
libtpu: 0.0.40
codegen_flags: <defaults>
</compile_context>

<pallas_src>
import functools

import jax
import jax.numpy as jnp
from jax.experimental import pallas as pl
from jax.experimental.pallas import tpu as pltpu

_EPS = 1e-8


def _round_up(x, m):
    return (x + m - 1) // m * m


def _sisdr_stats_kernel(sig_ref, gt_ref, stats_ref, cross_ref, *,
                        offset, time_len, block_t):
    """Accumulate per-row and pairwise (gram) time-axis statistics.

    sig_ref / gt_ref : (rows_block, block_t) tiles of the flattened
                       (batch*src, time) inputs.
    stats_ref        : (1, 5, rows_block) resident accumulator with rows
                       [S_sig, S_gt, P, E, HEAD_ENERGY].
    cross_ref        : (1, rows_block, rows_block) resident accumulator,
                       cross[i, j] = sum_t sig_i[t] * gt_j[t]  (t >= offset).
    """
    tb = pl.program_id(1)

    @pl.when(tb == 0)
    def _init():
        stats_ref[...] = jnp.zeros_like(stats_ref)
        cross_ref[...] = jnp.zeros_like(cross_ref)

    def accumulate(sig, gt):
        stats_ref[0, 0, :] += jnp.sum(sig, axis=-1)          # S_sig
        stats_ref[0, 1, :] += jnp.sum(gt, axis=-1)           # S_gt
        stats_ref[0, 2, :] += jnp.sum(sig * sig, axis=-1)    # P
        stats_ref[0, 3, :] += jnp.sum(gt * gt, axis=-1)      # E
        # Pairwise cross-correlation on the MXU (contract the lane/time axis
        # of both operands).
        # TODO(synk): audit the lowering (vxpose count per 128-lane chunk of
        # `gt`); if XLU-bound on v7x, reformulate as a single stacked
        # [sig; gt; ones] gram so one transpose yields C, P, E, S together.
        cross_ref[0] += jax.lax.dot_general(
            sig, gt, (((1,), (1,)), ((), ())),
            preferred_element_type=jnp.float32)

    sig = sig_ref[...].astype(jnp.float32)   # (rows, bt)
    gt = gt_ref[...].astype(jnp.float32)     # (rows, bt)
    rows, bt = sig.shape

    # A block needs masking only if it overlaps the offset head [0, offset)
    # or the ragged tail beyond the true time length (Pallas does NOT
    # zero-fill out-of-range lane reads of the last block).
    block_start = tb * block_t
    needs_mask = jnp.logical_or(block_start < offset,
                                block_start + block_t > time_len)

    @pl.when(jnp.logical_not(needs_mask))
    def _fast():                      # interior blocks: no iota / select cost
        accumulate(sig, gt)

    @pl.when(needs_mask)
    def _masked():
        col = jax.lax.broadcasted_iota(jnp.int32, (rows, bt), 1) + block_start
        valid = col < time_len
        in_range = jnp.logical_and(valid, col >= offset)
        accumulate(jnp.where(in_range, sig, 0.0),
                   jnp.where(in_range, gt, 0.0))
        # Energy of the masked-out head (t < offset) for the regularizer:
        # full-signal energy = P + HEAD in the wrapper.
        head = jnp.logical_and(valid, col < offset)
        sig_h = jnp.where(head, sig, 0.0)
        stats_ref[0, 4, :] += jnp.sum(sig_h * sig_h, axis=-1)


def sisdr_loss_pallas(signal, gt, offset, l=0.001):
    """sum(pairwise_neg_sisdr(signal[..., offset:], gt[..., offset:]))
       + l * sum(signal**2) / signal.shape[-1]"""
    assert signal.ndim == 3 and signal.shape == gt.shape, \
        "pairwise SI-SDR expects matching [batch, nsrc, time] inputs"
    B, N, T = signal.shape
    offset = int(offset)
    assert 0 <= offset < T, "offset slice produced an empty time axis"

    # --- row packing: flatten (B,N,T)->(B*N,T) (free reshape) and pack whole
    # batches per block so the 8 f32 sublanes are filled. --------------------
    R = B * N
    bb = 1
    for cand in range(min(B, max(1, 8 // N)), 0, -1):
        if B % cand == 0:
            bb = cand
            break
    rows_block = bb * N
    n_rb = R // rows_block
    if rows_block % 8 != 0 and n_rb > 1:
        # keep the sublane-axis block dim either 8-divisible or full-extent
        bb, rows_block, n_rb = B, R, 1

    sig2 = signal.reshape(R, T)
    gt2 = gt.reshape(R, T)

    # --- per-generation VMEM budget for the time tile -----------------------
    itemsize = max(jnp.dtype(signal.dtype).itemsize, jnp.dtype(gt.dtype).itemsize)
    try:
        vmem_cap = int(pltpu.get_tpu_info().vmem_capacity_bytes)
    except Exception:
        vmem_cap = 64 * 1024 * 1024            # v7x-safe fallback
    # ~8 MiB per input block on 128 MiB parts (v5e/v6e), ~4 MiB on v7x.
    budget = min(8 * 1024 * 1024, max(2 * 1024 * 1024, vmem_cap // 16))
    rows_pad = _round_up(rows_block, 8)        # sublane padding in VMEM
    cap = max(128, (budget // (rows_pad * itemsize)) // 128 * 128)
    block_t = T if T <= cap else cap           # full dim OR multiple of 128
    n_tb = -(-T // block_t)

    block_bytes = rows_pad * block_t * itemsize
    # 2 inputs x 2 pipeline buffers + accumulators/internal scratch headroom.
    vmem_limit = max(32 * 1024 * 1024, 4 * block_bytes + 8 * 1024 * 1024)

    kernel = functools.partial(_sisdr_stats_kernel, offset=offset,
                               time_len=T, block_t=block_t)

    flops = 2 * R * rows_block * T + 8 * R * T
    bytes_accessed = (2 * R * T * itemsize
                      + 4 * n_rb * (5 + rows_block) * rows_block)

    # TODO(synk): when n_rb == 1 on a 2-TensorCore part (v7x), split the time
    # axis into two parallel halves with separate accumulators so both TCs work.
    stats, cross = pl.pallas_call(
        kernel,
        out_shape=(
            jax.ShapeDtypeStruct((n_rb, 5, rows_block), jnp.float32),
            jax.ShapeDtypeStruct((n_rb, rows_block, rows_block), jnp.float32),
        ),
        grid_spec=pltpu.PrefetchScalarGridSpec(
            num_scalar_prefetch=0,
            grid=(n_rb, n_tb),
            in_specs=[
                pl.BlockSpec((rows_block, block_t), lambda r, t: (r, t)),
                pl.BlockSpec((rows_block, block_t), lambda r, t: (r, t)),
            ],
            out_specs=(
                pl.BlockSpec((1, 5, rows_block), lambda r, t: (r, 0, 0)),
                pl.BlockSpec((1, rows_block, rows_block), lambda r, t: (r, 0, 0)),
            ),
        ),
        compiler_params=pltpu.CompilerParams(
            dimension_semantics=("parallel", "arbitrary"),
            vmem_limit_bytes=int(vmem_limit),
        ),
        cost_estimate=pl.CostEstimate(
            flops=int(flops), transcendentals=0,
            bytes_accessed=int(bytes_accessed)),
    )(sig2, gt2)

    # --- tiny O(B*N*N) closed-form SI-SDR combine (plain JAX) ---------------
    stats = jnp.transpose(stats, (0, 2, 1)).reshape(B, N, 5)
    s_sig = stats[..., 0]
    s_gt = stats[..., 1]
    p_raw = stats[..., 2]
    e_raw = stats[..., 3]
    head_e = stats[..., 4]

    # per-batch NxN blocks on the diagonal of each (rows_block, rows_block) gram
    cdiag = jnp.stack(
        [cross[:, i * N:(i + 1) * N, i * N:(i + 1) * N] for i in range(bb)],
        axis=1).reshape(B, N, N)

    t_eff = jnp.float32(T - offset)
    mean_sig = s_sig / t_eff
    mean_gt = s_gt / t_eff

    # zero-mean-corrected pairwise dot and energies (clamped to avoid NaNs
    # from catastrophic cancellation on DC-heavy signals)
    d = cdiag - t_eff * mean_sig[:, :, None] * mean_gt[:, None, :]     # (B,N,N)
    p_c = jnp.maximum(p_raw - t_eff * mean_sig * mean_sig, 0.0)        # est power
    e_c = jnp.maximum(e_raw - t_eff * mean_gt * mean_gt, 0.0)          # tgt energy

    tgt_e = e_c[:, None, :] + _EPS
    d2 = d * d
    proj_sq = d2 * e_c[:, None, :] / (tgt_e * tgt_e)                   # ||proj||^2
    noise_sq = jnp.maximum(
        p_c[:, :, None] - 2.0 * d2 / tgt_e + d2 * e_c[:, None, :] / (tgt_e * tgt_e),
        0.0)                                                           # ||e_noise||^2
    ratio = proj_sq / (noise_sq + _EPS)
    neg_sisdr = -10.0 * jnp.log10(ratio + _EPS)

    reg = jnp.float32(l) * (jnp.sum(p_raw) + jnp.sum(head_e)) / jnp.float32(T)
    return jnp.sum(neg_sisdr) + reg          # float32, like the torch module


def _ref_sisdr_loss(signal, gt, offset, l):
    """Pure-JAX mirror of asteroid.losses.pairwise_neg_sisdr + regularizer."""
    eps = 1e-8
    est = signal[..., offset:].astype(jnp.float32)
    tgt = gt[..., offset:].astype(jnp.float32)
    est = est - jnp.mean(est, axis=-1, keepdims=True)
    tgt = tgt - jnp.mean(tgt, axis=-1, keepdims=True)
    s_target = tgt[:, None, :, :]        # (B,1,N,T')
    s_estimate = est[:, :, None, :]      # (B,N,1,T')
    dot = jnp.sum(s_estimate * s_target, axis=-1, keepdims=True)
    tgt_energy = jnp.sum(s_target ** 2, axis=-1, keepdims=True) + eps
    proj = dot * s_target / tgt_energy
    e_noise = s_estimate - proj
    sdr = jnp.sum(proj ** 2, axis=-1) / (jnp.sum(e_noise ** 2, axis=-1) + eps)
    neg = -10.0 * jnp.log10(sdr + eps)
    reg = l * jnp.sum(signal.astype(jnp.float32) ** 2) / signal.shape[-1]
    return jnp.sum(neg) + reg


if __name__ == "__main__":
    key = jax.random.PRNGKey(0)
    k1, k2 = jax.random.split(key)

    # [batch, nsrc, time] audio-style inputs for pairwise SI-SDR.
    offset = 16
    l = 0.001
    signal = jax.random.normal(k1, (2, 4, 512), dtype=jnp.float32)
    gt = jax.random.normal(k2, (2, 4, 512), dtype=jnp.float32)

    out = sisdr_loss_pallas(signal, gt, offset, l)
    out = jax.block_until_ready(out)

    ref = _ref_sisdr_loss(signal, gt, offset, l)
    assert jnp.allclose(out, ref, rtol=1e-3, atol=1e-3), (out, ref)

    print("KERNEL_OK")
</pallas_src>

<mosaic_0001>
module attributes {stable_mosaic.version = 11 : i64} {
  func.func @_sisdr_stats_kernel(%arg0: i32, %arg1: i32, %arg2: memref<8x512xf32, #tpu.memory_space<vmem>>, %arg3: memref<8x512xf32, #tpu.memory_space<vmem>>, %arg4: memref<1x5x8xf32, #tpu.memory_space<vmem>>, %arg5: memref<1x8x8xf32, #tpu.memory_space<vmem>>) attributes {dimension_semantics = [#tpu.dimension_semantics<parallel>, #tpu.dimension_semantics<arbitrary>], iteration_bounds = array<i64: 1, 1>, scalar_prefetch = 0 : i64, scratch_operands = 0 : i64, tpu.core_type = #tpu.core_type<tc>, window_params = [{transform_indices = @transform_0, window_bounds = array<i64: 8, 512>}, {transform_indices = @transform_1, window_bounds = array<i64: 8, 512>}, {transform_indices = @transform_2, window_bounds = array<i64: 1, 5, 8>}, {transform_indices = @transform_3, window_bounds = array<i64: 1, 8, 8>}]} {
    %c0_i32 = arith.constant 0 : i32
    %0 = arith.cmpi eq, %arg1, %c0_i32 : i32
    %1 = arith.extui %0 : i1 to i32
    %c0_i32_0 = arith.constant 0 : i32
    %2 = arith.cmpi ne, %1, %c0_i32_0 : i32
    scf.if %2 {
      %cst = arith.constant 0.000000e+00 : f32
      %15 = vector.broadcast %cst : f32 to vector<1x5x8xf32>
      %c0_8 = arith.constant 0 : index
      %c0_9 = arith.constant 0 : index
      %c0_10 = arith.constant 0 : index
      %16 = vector.load %arg4[%c0_8, %c0_9, %c0_10] : memref<1x5x8xf32, #tpu.memory_space<vmem>>, vector<1x5x8xf32>
      tpu.vector_store %arg4[%c0_8, %c0_9, %c0_10], %15 {strides = array<i32>} : memref<1x5x8xf32, #tpu.memory_space<vmem>>, vector<1x5x8xf32>,
      %cst_11 = arith.constant 0.000000e+00 : f32
      %17 = vector.broadcast %cst_11 : f32 to vector<1x8x8xf32>
      %c0_12 = arith.constant 0 : index
      %c0_13 = arith.constant 0 : index
      %c0_14 = arith.constant 0 : index
      %18 = vector.load %arg5[%c0_12, %c0_13, %c0_14] : memref<1x8x8xf32, #tpu.memory_space<vmem>>, vector<1x8x8xf32>
      tpu.vector_store %arg5[%c0_12, %c0_13, %c0_14], %17 {strides = array<i32>} : memref<1x8x8xf32, #tpu.memory_space<vmem>>, vector<1x8x8xf32>,
    } else {
    }
    %c0 = arith.constant 0 : index
    %c0_1 = arith.constant 0 : index
    %3 = vector.load %arg2[%c0, %c0_1] : memref<8x512xf32, #tpu.memory_space<vmem>>, vector<8x512xf32>
    %c0_2 = arith.constant 0 : index
    %c0_3 = arith.constant 0 : index
    %4 = vector.load %arg3[%c0_2, %c0_3] : memref<8x512xf32, #tpu.memory_space<vmem>>, vector<8x512xf32>
    %c512_i32 = arith.constant 512 : i32
    %5 = arith.muli %arg1, %c512_i32 : i32
    %c16_i32 = arith.constant 16 : i32
    %6 = arith.cmpi slt, %5, %c16_i32 : i32
    %c512_i32_4 = arith.constant 512 : i32
    %7 = arith.addi %5, %c512_i32_4 : i32
    %c512_i32_5 = arith.constant 512 : i32
    %8 = arith.cmpi sgt, %7, %c512_i32_5 : i32
    %9 = arith.ori %6, %8 : i1
    %true = arith.constant true
    %10 = arith.xori %9, %true : i1
    %11 = arith.extui %10 : i1 to i32
    %c0_i32_6 = arith.constant 0 : i32
    %12 = arith.cmpi ne, %11, %c0_i32_6 : i32
    scf.if %12 {
      %c0_8 = arith.constant 0 : index
      %c0_9 = arith.constant 0 : index
      %c0_10 = arith.constant 0 : index
      %15 = vector.load %arg4[%c0_8, %c0_9, %c0_10] : memref<1x5x8xf32, #tpu.memory_space<vmem>>, vector<1x1x8xf32>
      %16 = vector.shape_cast %15 : vector<1x1x8xf32> to vector<8xf32>
      %cst = arith.constant dense<0.000000e+00> : vector<8xf32>
      %17 = vector.multi_reduction <add>, %3, %cst [1] : vector<8x512xf32> to vector<8xf32>
      %18 = arith.addf %16, %17 : vector<8xf32>
      %c0_11 = arith.constant 0 : index
      %c0_12 = arith.constant 0 : index
      %c0_13 = arith.constant 0 : index
      %19 = vector.load %arg4[%c0_11, %c0_12, %c0_13] : memref<1x5x8xf32, #tpu.memory_space<vmem>>, vector<1x1x8xf32>
      %20 = vector.shape_cast %19 : vector<1x1x8xf32> to vector<8xf32>
      %21 = vector.shape_cast %18 : vector<8xf32> to vector<1x1x8xf32>
      tpu.vector_store %arg4[%c0_11, %c0_12, %c0_13], %21 {strides = array<i32>} : memref<1x5x8xf32, #tpu.memory_space<vmem>>, vector<1x1x8xf32>,
      %c0_14 = arith.constant 0 : index
      %c1 = arith.constant 1 : index
      %c0_15 = arith.constant 0 : index
      %22 = vector.load %arg4[%c0_14, %c1, %c0_15] : memref<1x5x8xf32, #tpu.memory_space<vmem>>, vector<1x1x8xf32>
      %23 = vector.shape_cast %22 : vector<1x1x8xf32> to vector<8xf32>
      %cst_16 = arith.constant dense<0.000000e+00> : vector<8xf32>
      %24 = vector.multi_reduction <add>, %4, %cst_16 [1] : vector<8x512xf32> to vector<8xf32>
      %25 = arith.addf %23, %24 : vector<8xf32>
      %c0_17 = arith.constant 0 : index
      %c1_18 = arith.constant 1 : index
      %c0_19 = arith.constant 0 : index
      %26 = vector.load %arg4[%c0_17, %c1_18, %c0_19] : memref<1x5x8xf32, #tpu.memory_space<vmem>>, vector<1x1x8xf32>
      %27 = vector.shape_cast %26 : vector<1x1x8xf32> to vector<8xf32>
      %28 = vector.shape_cast %25 : vector<8xf32> to vector<1x1x8xf32>
      tpu.vector_store %arg4[%c0_17, %c1_18, %c0_19], %28 {strides = array<i32>} : memref<1x5x8xf32, #tpu.memory_space<vmem>>, vector<1x1x8xf32>,
      %c0_20 = arith.constant 0 : index
      %c2 = arith.constant 2 : index
      %c0_21 = arith.constant 0 : index
      %29 = vector.load %arg4[%c0_20, %c2, %c0_21] : memref<1x5x8xf32, #tpu.memory_space<vmem>>, vector<1x1x8xf32>
      %30 = vector.shape_cast %29 : vector<1x1x8xf32> to vector<8xf32>
      %31 = arith.mulf %3, %3 : vector<8x512xf32>
      %cst_22 = arith.constant dense<0.000000e+00> : vector<8xf32>
      %32 = vector.multi_reduction <add>, %31, %cst_22 [1] : vector<8x512xf32> to vector<8xf32>
      %33 = arith.addf %30, %32 : vector<8xf32>
      %c0_23 = arith.constant 0 : index
      %c2_24 = arith.constant 2 : index
      %c0_25 = arith.constant 0 : index
      %34 = vector.load %arg4[%c0_23, %c2_24, %c0_25] : memref<1x5x8xf32, #tpu.memory_space<vmem>>, vector<1x1x8xf32>
      %35 = vector.shape_cast %34 : vector<1x1x8xf32> to vector<8xf32>
      %36 = vector.shape_cast %33 : vector<8xf32> to vector<1x1x8xf32>
      tpu.vector_store %arg4[%c0_23, %c2_24, %c0_25], %36 {strides = array<i32>} : memref<1x5x8xf32, #tpu.memory_space<vmem>>, vector<1x1x8xf32>,
      %c0_26 = arith.constant 0 : index
      %c3 = arith.constant 3 : index
      %c0_27 = arith.constant 0 : index
      %37 = vector.load %arg4[%c0_26, %c3, %c0_27] : memref<1x5x8xf32, #tpu.memory_space<vmem>>, vector<1x1x8xf32>
      %38 = vector.shape_cast %37 : vector<1x1x8xf32> to vector<8xf32>
      %39 = arith.mulf %4, %4 : vector<8x512xf32>
      %cst_28 = arith.constant dense<0.000000e+00> : vector<8xf32>
      %40 = vector.multi_reduction <add>, %39, %cst_28 [1] : vector<8x512xf32> to vector<8xf32>
      %41 = arith.addf %38, %40 : vector<8xf32>
      %c0_29 = arith.constant 0 : index
      %c3_30 = arith.constant 3 : index
      %c0_31 = arith.constant 0 : index
      %42 = vector.load %arg4[%c0_29, %c3_30, %c0_31] : memref<1x5x8xf32, #tpu.memory_space<vmem>>, vector<1x1x8xf32>
      %43 = vector.shape_cast %42 : vector<1x1x8xf32> to vector<8xf32>
      %44 = vector.shape_cast %41 : vector<8xf32> to vector<1x1x8xf32>
      tpu.vector_store %arg4[%c0_29, %c3_30, %c0_31], %44 {strides = array<i32>} : memref<1x5x8xf32, #tpu.memory_space<vmem>>, vector<1x1x8xf32>,
      %c0_32 = arith.constant 0 : index
      %c0_33 = arith.constant 0 : index
      %c0_34 = arith.constant 0 : index
      %45 = vector.load %arg5[%c0_32, %c0_33, %c0_34] : memref<1x8x8xf32, #tpu.memory_space<vmem>>, vector<1x8x8xf32>
      %46 = vector.shape_cast %45 : vector<1x8x8xf32> to vector<8x8xf32>
      %cst_35 = arith.constant dense<0.000000e+00> : vector<8x8xf32>
      %47 = tpu.matmul %3, %4, %cst_35 {dimension_numbers = #tpu.dot_dimension_numbers<[1], [1], [0], [0], [0, 0, 1, 0], [], []>} : vector<8x512xf32>, vector<8x512xf32>, vector<8x8xf32> -> vector<8x8xf32>
      %48 = arith.addf %46, %47 : vector<8x8xf32>
      %c0_36 = arith.constant 0 : index
      %c0_37 = arith.constant 0 : index
      %c0_38 = arith.constant 0 : index
      %49 = vector.load %arg5[%c0_36, %c0_37, %c0_38] : memref<1x8x8xf32, #tpu.memory_space<vmem>>, vector<1x8x8xf32>
      %50 = vector.shape_cast %49 : vector<1x8x8xf32> to vector<8x8xf32>
      %51 = vector.shape_cast %48 : vector<8x8xf32> to vector<1x8x8xf32>
      tpu.vector_store %arg5[%c0_36, %c0_37, %c0_38], %51 {strides = array<i32>} : memref<1x8x8xf32, #tpu.memory_space<vmem>>, vector<1x8x8xf32>,
    } else {
    }
    %13 = arith.extui %9 : i1 to i32
    %c0_i32_7 = arith.constant 0 : i32
    %14 = arith.cmpi ne, %13, %c0_i32_7 : i32
    scf.if %14 {
      %15 = tpu.iota {dimensions = array<i32: 1>} : vector<8x512xi32>
      %16 = vector.broadcast %5 : i32 to vector<8x512xi32>
      %17 = arith.addi %15, %16 : vector<8x512xi32>
      %c512_i32_8 = arith.constant 512 : i32
      %18 = vector.broadcast %c512_i32_8 : i32 to vector<8x512xi32>
      %19 = arith.cmpi slt, %17, %18 : vector<8x512xi32>
      %c16_i32_9 = arith.constant 16 : i32
      %20 = vector.broadcast %c16_i32_9 : i32 to vector<8x512xi32>
      %21 = arith.cmpi sge, %17, %20 : vector<8x512xi32>
      %22 = arith.andi %19, %21 : vector<8x512xi1>
      %cst = arith.constant 0.000000e+00 : f32
      %23 = vector.broadcast %cst : f32 to vector<8x512xf32>
      %24 = arith.select %22, %3, %23 : vector<8x512xi1>, vector<8x512xf32>
      %cst_10 = arith.constant 0.000000e+00 : f32
      %25 = vector.broadcast %cst_10 : f32 to vector<8x512xf32>
      %26 = arith.select %22, %4, %25 : vector<8x512xi1>, vector<8x512xf32>
      %c0_11 = arith.constant 0 : index
      %c0_12 = arith.constant 0 : index
      %c0_13 = arith.constant 0 : index
      %27 = vector.load %arg4[%c0_11, %c0_12, %c0_13] : memref<1x5x8xf32, #tpu.memory_space<vmem>>, vector<1x1x8xf32>
      %28 = vector.shape_cast %27 : vector<1x1x8xf32> to vector<8xf32>
      %cst_14 = arith.constant dense<0.000000e+00> : vector<8xf32>
      %29 = vector.multi_reduction <add>, %24, %cst_14 [1] : vector<8x512xf32> to vector<8xf32>
      %30 = arith.addf %28, %29 : vector<8xf32>
      %c0_15 = arith.constant 0 : index
      %c0_16 = arith.constant 0 : index
      %c0_17 = arith.constant 0 : index
      %31 = vector.load %arg4[%c0_15, %c0_16, %c0_17] : memref<1x5x8xf32, #tpu.memory_space<vmem>>, vector<1x1x8xf32>
      %32 = vector.shape_cast %31 : vector<1x1x8xf32> to vector<8xf32>
      %33 = vector.shape_cast %30 : vector<8xf32> to vector<1x1x8xf32>
      tpu.vector_store %arg4[%c0_15, %c0_16, %c0_17], %33 {strides = array<i32>} : memref<1x5x8xf32, #tpu.memory_space<vmem>>, vector<1x1x8xf32>,
      %c0_18 = arith.constant 0 : index
      %c1 = arith.constant 1 : index
      %c0_19 = arith.constant 0 : index
      %34 = vector.load %arg4[%c0_18, %c1, %c0_19] : memref<1x5x8xf32, #tpu.memory_space<vmem>>, vector<1x1x8xf32>
      %35 = vector.shape_cast %34 : vector<1x1x8xf32> to vector<8xf32>
      %cst_20 = arith.constant dense<0.000000e+00> : vector<8xf32>
      %36 = vector.multi_reduction <add>, %26, %cst_20 [1] : vector<8x512xf32> to vector<8xf32>
      %37 = arith.addf %35, %36 : vector<8xf32>
      %c0_21 = arith.constant 0 : index
      %c1_22 = arith.constant 1 : index
      %c0_23 = arith.constant 0 : index
      %38 = vector.load %arg4[%c0_21, %c1_22, %c0_23] : memref<1x5x8xf32, #tpu.memory_space<vmem>>, vector<1x1x8xf32>
      %39 = vector.shape_cast %38 : vector<1x1x8xf32> to vector<8xf32>
      %40 = vector.shape_cast %37 : vector<8xf32> to vector<1x1x8xf32>
      tpu.vector_store %arg4[%c0_21, %c1_22, %c0_23], %40 {strides = array<i32>} : memref<1x5x8xf32, #tpu.memory_space<vmem>>, vector<1x1x8xf32>,
      %c0_24 = arith.constant 0 : index
      %c2 = arith.constant 2 : index
      %c0_25 = arith.constant 0 : index
      %41 = vector.load %arg4[%c0_24, %c2, %c0_25] : memref<1x5x8xf32, #tpu.memory_space<vmem>>, vector<1x1x8xf32>
      %42 = vector.shape_cast %41 : vector<1x1x8xf32> to vector<8xf32>
      %43 = arith.mulf %24, %24 : vector<8x512xf32>
      %cst_26 = arith.constant dense<0.000000e+00> : vector<8xf32>
      %44 = vector.multi_reduction <add>, %43, %cst_26 [1] : vector<8x512xf32> to vector<8xf32>
      %45 = arith.addf %42, %44 : vector<8xf32>
      %c0_27 = arith.constant 0 : index
      %c2_28 = arith.constant 2 : index
      %c0_29 = arith.constant 0 : index
      %46 = vector.load %arg4[%c0_27, %c2_28, %c0_29] : memref<1x5x8xf32, #tpu.memory_space<vmem>>, vector<1x1x8xf32>
      %47 = vector.shape_cast %46 : vector<1x1x8xf32> to vector<8xf32>
      %48 = vector.shape_cast %45 : vector<8xf32> to vector<1x1x8xf32>
      tpu.vector_store %arg4[%c0_27, %c2_28, %c0_29], %48 {strides = array<i32>} : memref<1x5x8xf32, #tpu.memory_space<vmem>>, vector<1x1x8xf32>,
      %c0_30 = arith.constant 0 : index
      %c3 = arith.constant 3 : index
      %c0_31 = arith.constant 0 : index
      %49 = vector.load %arg4[%c0_30, %c3, %c0_31] : memref<1x5x8xf32, #tpu.memory_space<vmem>>, vector<1x1x8xf32>
      %50 = vector.shape_cast %49 : vector<1x1x8xf32> to vector<8xf32>
      %51 = arith.mulf %26, %26 : vector<8x512xf32>
      %cst_32 = arith.constant dense<0.000000e+00> : vector<8xf32>
      %52 = vector.multi_reduction <add>, %51, %cst_32 [1] : vector<8x512xf32> to vector<8xf32>
      %53 = arith.addf %50, %52 : vector<8xf32>
      %c0_33 = arith.constant 0 : index
      %c3_34 = arith.constant 3 : index
      %c0_35 = arith.constant 0 : index
      %54 = vector.load %arg4[%c0_33, %c3_34, %c0_35] : memref<1x5x8xf32, #tpu.memory_space<vmem>>, vector<1x1x8xf32>
      %55 = vector.shape_cast %54 : vector<1x1x8xf32> to vector<8xf32>
      %56 = vector.shape_cast %53 : vector<8xf32> to vector<1x1x8xf32>
      tpu.vector_store %arg4[%c0_33, %c3_34, %c0_35], %56 {strides = array<i32>} : memref<1x5x8xf32, #tpu.memory_space<vmem>>, vector<1x1x8xf32>,
      %c0_36 = arith.constant 0 : index
      %c0_37 = arith.constant 0 : index
      %c0_38 = arith.constant 0 : index
      %57 = vector.load %arg5[%c0_36, %c0_37, %c0_38] : memref<1x8x8xf32, #tpu.memory_space<vmem>>, vector<1x8x8xf32>
      %58 = vector.shape_cast %57 : vector<1x8x8xf32> to vector<8x8xf32>
      %cst_39 = arith.constant dense<0.000000e+00> : vector<8x8xf32>
      %59 = tpu.matmul %24, %26, %cst_39 {dimension_numbers = #tpu.dot_dimension_numbers<[1], [1], [0], [0], [0, 0, 1, 0], [], []>} : vector<8x512xf32>, vector<8x512xf32>, vector<8x8xf32> -> vector<8x8xf32>
      %60 = arith.addf %58, %59 : vector<8x8xf32>
      %c0_40 = arith.constant 0 : index
      %c0_41 = arith.constant 0 : index
      %c0_42 = arith.constant 0 : index
      %61 = vector.load %arg5[%c0_40, %c0_41, %c0_42] : memref<1x8x8xf32, #tpu.memory_space<vmem>>, vector<1x8x8xf32>
      %62 = vector.shape_cast %61 : vector<1x8x8xf32> to vector<8x8xf32>
      %63 = vector.shape_cast %60 : vector<8x8xf32> to vector<1x8x8xf32>
      tpu.vector_store %arg5[%c0_40, %c0_41, %c0_42], %63 {strides = array<i32>} : memref<1x8x8xf32, #tpu.memory_space<vmem>>, vector<1x8x8xf32>,
      %c16_i32_43 = arith.constant 16 : i32
      %64 = vector.broadcast %c16_i32_43 : i32 to vector<8x512xi32>
      %65 = arith.cmpi slt, %17, %64 : vector<8x512xi32>
      %66 = arith.andi %19, %65 : vector<8x512xi1>
      %cst_44 = arith.constant 0.000000e+00 : f32
      %67 = vector.broadcast %cst_44 : f32 to vector<8x512xf32>
      %68 = arith.select %66, %3, %67 : vector<8x512xi1>, vector<8x512xf32>
      %c0_45 = arith.constant 0 : index
      %c4 = arith.constant 4 : index
      %c0_46 = arith.constant 0 : index
      %69 = vector.load %arg4[%c0_45, %c4, %c0_46] : memref<1x5x8xf32, #tpu.memory_space<vmem>>, vector<1x1x8xf32>
      %70 = vector.shape_cast %69 : vector<1x1x8xf32> to vector<8xf32>
      %71 = arith.mulf %68, %68 : vector<8x512xf32>
      %cst_47 = arith.constant dense<0.000000e+00> : vector<8xf32>
      %72 = vector.multi_reduction <add>, %71, %cst_47 [1] : vector<8x512xf32> to vector<8xf32>
      %73 = arith.addf %70, %72 : vector<8xf32>
      %c0_48 = arith.constant 0 : index
      %c4_49 = arith.constant 4 : index
      %c0_50 = arith.constant 0 : index
      %74 = vector.load %arg4[%c0_48, %c4_49, %c0_50] : memref<1x5x8xf32, #tpu.memory_space<vmem>>, vector<1x1x8xf32>
      %75 = vector.shape_cast %74 : vector<1x1x8xf32> to vector<8xf32>
      %76 = vector.shape_cast %73 : vector<8xf32> to vector<1x1x8xf32>
      tpu.vector_store %arg4[%c0_48, %c4_49, %c0_50], %76 {strides = array<i32>} : memref<1x5x8xf32, #tpu.memory_space<vmem>>, vector<1x1x8xf32>,
    } else {
    }
    return
  }
  func.func @transform_0(%arg0: i32, %arg1: i32) -> (i32, i32) {
    %c0_i32 = arith.constant 0 : i32
    return %arg0, %arg1 : i32, i32
  }
  func.func @transform_1(%arg0: i32, %arg1: i32) -> (i32, i32) {
    %c0_i32 = arith.constant 0 : i32
    return %arg0, %arg1 : i32, i32
  }
  func.func @transform_2(%arg0: i32, %arg1: i32) -> (i32, i32, i32) {
    %c0_i32 = arith.constant 0 : i32
    %c0_i32_0 = arith.constant 0 : i32
    %c0_i32_1 = arith.constant 0 : i32
    return %arg0, %c0_i32, %c0_i32_0 : i32, i32, i32
  }
  func.func @transform_3(%arg0: i32, %arg1: i32) -> (i32, i32, i32) {
    %c0_i32 = arith.constant 0 : i32
    %c0_i32_0 = arith.constant 0 : i32
    %c0_i32_1 = arith.constant 0 : i32
    return %arg0, %c0_i32, %c0_i32_0 : i32, i32, i32
  }
}

</mosaic_0001>

<bundles_post_ra>
// kernel: tpu_custom_call.1
= control target key start
LH: loop header
LB: loop body
LE: loop exit
PB: predicated region body
PF: predicated region fallthrough
CT: control target
= control target key end

     0   :  { %9 = vsyncpa [#allocation3], 0  ;;  %s721_s0 = inlined_call_operand.hbm [shape: f32[8,512], index: 0, kind: input, shape index: {}]   ;;  %s722_s1 = inlined_call_operand.hbm [shape: f32[8,512], index: 1, kind: input, shape index: {}]   ;;  %s723_s2 = inlined_call_operand.vmem [shape: f32[1,5,8], index: 2, kind: output, shape index: {0}]   ;;  %s724_s3 = inlined_call_operand.hbm [shape: f32[1,8,8], index: 3, kind: output, shape index: {1}]  }
   0x1   :  { %10 = vsyncpa [#allocation6], 0 }
   0x2   :  { %11 = vsyncpa [#allocation4], 0  ;;  %s637_s12 = smov [#allocation2]   ;;  %s638_s14 = smov [#allocation5]  }
   0x3   :  { %s18_s13 = sshll.u32 %s637_s12, 4  ;;  %s28_s15 = sshll.u32 %s638_s14, 4  ;;  %s19_s13 = int_to_ptr.vmem [resolvable:$true] %s18_s13  ;;  %s29_s15 = int_to_ptr.vmem [resolvable:$true] %s28_s15 }
   0x4   :  { %s579_s16 = scalar_lea.vmem %s19_s13, 512  ;;  %p584_p1 = scmp.lt.s32.totalorder %s19_s13, %s19_s13 }
   0x5   :  { %p580_p0 = scmp.ne.s32.totalorder %s19_s13, %s579_s16  ;;  %p585_p2 = scmp.lt.s32.totalorder %s579_s16, %s579_s16 }
   0x7   :  { %p586_p3 = por %p585_p2, %p584_p1 }
   0x9   :  { %p587_p4 = pnand %p586_p3, %p580_p0 }
   0xb   :  { %590 = shalt.err (!%p587_p4)
}
   0xc   :  { %21 = dma.hbm_to_vmem [thread:$0]  %s721_s0, 512, %s19_s13, [#allocation3]  }
   0xd   :  { %s599_s19 = scalar_lea.vmem %s29_s15, 512  ;;  %p604_p6 = scmp.lt.s32.totalorder %s29_s15, %s29_s15 }
   0xe   :  { %p600_p5 = scmp.ne.s32.totalorder %s29_s15, %s599_s19  ;;  %p605_p7 = scmp.lt.s32.totalorder %s599_s19, %s599_s19 }
  0x10   :  { %p606_p8 = por %p605_p7, %p604_p6 }
  0x12   :  { %p607_p9 = pnand %p606_p8, %p600_p5 }
  0x14   :  { %610 = shalt.err (!%p607_p9)
}
  0x15   :  { %31 = dma.hbm_to_vmem [thread:$0]  %s722_s1, 512, %s29_s15, [#allocation6]  }
  0x16   :  { %631 = dma.done.wait [#allocation3], 512  }
  0x17   :  { %632 = vsyncadd [#allocation3], 4294966784 }
  0x18   :  { %633 = dma.done.wait [#allocation6], 512  }
  0x19   :  { %634 = vsyncadd [#allocation6], 4294966784  ;;  %v62_v0 = vlaneseq  ;;  %vm42_vm0 = vcmask 61440   ;;  %v639_v1 = vmov 0.0   ;;  %v51_v5 = vld [vmem:[#allocation5 + $0x8] sm:$0xff]  ;;  %v53_v6 = vld [vmem:[#allocation5 + $0x18] sm:$0xff] }
  0x1a   :  { %43 = vst.msk [vmem:[%s723_s2] sm:$0x1f] %vm42_vm0, %v639_v1  ;;  %v50_v7 = vld [vmem:[#allocation5] sm:$0xff]  ;;  %v141_v8 = vmul.f32 %v51_v5, %v51_v5  ;;  %188 = vmatprep.subr.mxu0 %v51_v5  ;;  %258 = vmatprep.subr.mxu1 %v53_v6  ;;  %v52_v10 = vld [vmem:[#allocation5 + $0x10] sm:$0xff]  ;;  %v47_v11 = vld [vmem:[#allocation2 + $0x8] sm:$0xff]  ;;  %v143_v30 = vmul.f32 %v53_v6, %v53_v6  ;;  %vm44_vm3 = vcmask 64512  }
  0x1b   :  { %v63_v2 = vand.u32 127, %v62_v0  ;;  %v100_v3 = vshrl.u32 %v62_v0, 7  ;;  %v49_v12 = vld [vmem:[#allocation2 + $0x18] sm:$0xff]  ;;  %259 = vmatpush1.xpose.msra.mxu1 %v52_v10  ;;  %v46_v15 = vld [vmem:[#allocation2] sm:$0xff]  ;;  %v48_v16 = vld [vmem:[#allocation2 + $0x10] sm:$0xff]  ;;  %v142_v17 = vmul.f32 %v52_v10, %v52_v10  ;;  %v123_v18 = vmul.f32 %v47_v11, %v47_v11  ;;  %222 = vmatprep.mubr.f32.mxu0 %v47_v11  ;;  %45 = vst.msk [vmem:[#allocation7] sm:$0xff] %vm44_vm3, %v639_v1 }
  0x1c   :  { %292 = vmatprep.mubr.f32.mxu1 %v49_v12  ;;  %v124_v22 = vmul.f32 %v48_v16, %v48_v16  ;;  %v125_v25 = vmul.f32 %v49_v12, %v49_v12  ;;  %vm105_vm4 = vcmask 57344   ;;  %s640_s15 = smov [#allocation7]  }
  0x1d   :  { %v670_v4 = vsub.s32 %v63_v2, %v100_v3  ;;  %vm76_vm1 = vcmp.ge.s32.totalorder %v63_v2, 16  ;;  %vm301_vm2 = vcmp.lt.s32.totalorder %v63_v2, 16  ;;  %s553_s16 = sshll.u32 %s640_s15, 4  ;;  %s554_s16 = int_to_ptr.vmem [resolvable:$true] %s553_s16 }
  0x1e   :  { %v88_v9 = vsel %vm76_vm1, %v50_v7, 0.0  ;;  %565 = vmatpush1.xpose.msk.msra.mxu0 %vm76_vm1, %v50_v7  ;;  %v84_v19 = vsel %vm76_vm1, %v46_v15, 0.0  ;;  %293 = vmatmul.mubr.f32.vlgmr.msra.gmra.mxu1 %v48_v16  ;;  %v309_v34 = vsel %vm301_vm2, %v46_v15, 0.0  ;;  %s611_s17 = scalar_lea.vmem %s554_s16, 128  ;;  %p616_p11 = scmp.lt.s32.totalorder %s554_s16, %s554_s16 }
  0x1f   :  { %v108_v13 = vadd.f32 %v88_v9, %v51_v5  ;;  %v140_v14 = vmul.f32 %v88_v9, %v88_v9  ;;  %v93_v20 = vadd.f32 %v84_v19, %v47_v11  ;;  %v122_v21 = vmul.f32 %v84_v19, %v84_v19  ;;  %p612_p10 = scmp.ne.s32.totalorder %s554_s16, %s611_s17  ;;  %p617_p12 = scmp.lt.s32.totalorder %s611_s17, %s611_s17 }
  0x20   :  { %v314_v36 = vmul.f32 %v309_v34, %v309_v34 }
  0x21   :  { %v144_v23 = vadd.f32 %v141_v8, %v140_v14  ;;  %566 = vmatmul.mubr.msk.f32.vlgmr.msra.gmra.mxu0 %vm76_vm1, %v46_v15  ;;  %v94_v24 = vadd.f32 %v93_v20, %v48_v16  ;;  %v126_v26 = vadd.f32 %v123_v18, %v122_v21  ;;  %v109_v27 = vadd.f32 %v108_v13, %v52_v10  ;;  %v92_v38 = vld [vmem:[%s723_s2] sm:$0x1]  ;;  %v121_v41 = vld [vmem:[%s723_s2 + $0x2] sm:$0x1]  ;;  %v107_v45 = vld [vmem:[%s723_s2 + $0x1] sm:$0x1]  ;;  %p618_p13 = por %p617_p12, %p616_p11 }
  0x22   :  { %v139_v49 = vld [vmem:[%s723_s2 + $0x3] sm:$0x1]  ;;  %v313_v53 = vld [vmem:[%s723_s2 + $0x4] sm:$0x1] }
  0x23   :  { %v95_v28 = vadd.f32 %v94_v24, %v49_v12  ;;  %v127_v29 = vadd.f32 %v126_v26, %v124_v22  ;;  %v145_v31 = vadd.f32 %v144_v23, %v142_v17  ;;  %v110_v33 = vadd.f32 %v109_v27, %v53_v6  ;;  %v157_v58 = vld [vmem:[#allocation7] sm:$0xff]  ;;  %p619_p0 = pnand %p618_p13, %p612_p10 }
  0x25   :  { %96 = vadd.xlane.f32.xlu0 %v95_v28  ;;  %v128_v32 = vadd.f32 %v127_v29, %v125_v25  ;;  %v146_v35 = vadd.f32 %v145_v31, %v143_v30 }
  0x27   :  { %129 = vadd.xlane.f32.xlu1 %v128_v32 }
  0x29   :  { %111 = vadd.xlane.f32.xlu0 %v110_v33 }
  0x2b   :  { %147 = vadd.xlane.f32.xlu1 %v146_v35 }
  0x2d   :  { %321 = vadd.xlane.f32.xlu0 %v314_v36 }
  0xae   :  { %v97_v37 = vpop.xlane.xlu0 %96 }
  0xaf   :  { %v102_v39 = vrot.slane %v97_v37, %v670_v4 }
  0xb0   :  { %v130_v40 = vpop.xlane.xlu1 %129 }
  0xb1   :  { %v104_v42 = vadd.f32 %v102_v39, %v92_v38  ;;  %v135_v43 = vrot.slane %v130_v40, %v670_v4 }
  0xb2   :  { %v112_v44 = vpop.xlane.xlu0 %111 }
  0xb3   :  { %106 = vst.msk [vmem:[%s723_s2] sm:$0x1] %vm105_vm4, %v104_v42  ;;  %v137_v46 = vadd.f32 %v135_v43, %v121_v41  ;;  %v117_v47 = vrot.slane %v112_v44, %v670_v4 }
  0xb4   :  { %v148_v48 = vpop.xlane.xlu1 %147 }
  0xb5   :  { %138 = vst.msk [vmem:[%s723_s2 + $0x2] sm:$0x1] %vm105_vm4, %v137_v46  ;;  %v119_v50 = vadd.f32 %v117_v47, %v107_v45  ;;  %v153_v51 = vrot.slane %v148_v48, %v670_v4 }
  0xb6   :  { %v322_v52 = vpop.xlane.xlu0 %321 }
  0xb7   :  { %120 = vst.msk [vmem:[%s723_s2 + $0x1] sm:$0x1] %vm105_vm4, %v119_v50  ;;  %v155_v54 = vadd.f32 %v153_v51, %v139_v49  ;;  %v327_v55 = vrot.slane %v322_v52, %v670_v4 }
  0xb9   :  { %156 = vst.msk [vmem:[%s723_s2 + $0x3] sm:$0x1] %vm105_vm4, %v155_v54  ;;  %v329_v56 = vadd.f32 %v327_v55, %v313_v53 }
  0xbb   :  { %330 = vst.msk [vmem:[%s723_s2 + $0x4] sm:$0x1] %vm105_vm4, %v329_v56 }
  0xde   :  { %v294_v59 = vpop.f32.mrf.mxu1 }
  0xe0   :  { %v296_v62 = vpop.f32.mrf.mxu1 }
  0xe1   :  { %v224_v57 = vpop.f32.mrf.mxu0 }
  0xe2   :  { %v295_v60 = vadd.f32 %v294_v59, %v224_v57 }
  0xe3   :  { %v226_v61 = vpop.f32.mrf.mxu0 }
  0xe4   :  { %v298_v63 = vadd.f32 %v295_v60, %v157_v58 }
  0xe6   :  { %300 = vst.msk [vmem:[#allocation7] sm:$0xff] %vm44_vm3, %v298_v63 }
  0xe7   :  { %622 = shalt.err (!%p619_p0)
}
  0xe8   :  { %556 = dma.vmem_to_hbm [thread:$0]  %s554_s16, 128, %s724_s3, [#allocation4]  }
  0xe9   :  { %635 = dma.done.wait [#allocation4], 128  }
  0xea   :  { %636 = vsyncadd [#allocation4], 4294967168 }
  0xeb   :  { %562 = vsyncpa [#allocation3], 1 }
  0xec   :  { %563 = vsyncpa [#allocation6], 1 }
  0xed   :  { %564 = vsyncpa [#allocation4], 1 }

</bundles_post_ra>
